<compile_context>
chip_gen: v7x
topology: tpu7x:2x2x1
jax: 0.10.0
libtpu: 0.0.40
codegen_flags: <defaults>
</compile_context>

<pallas_src>
import jax
import jax.numpy as jnp
from jax.experimental import pallas as pl
from jax.experimental.pallas import tpu as pltpu

D_IN, D_H1, D_H2, D_OUT = 4, 64, 16, 3


def mlp_kernel(x_ref, w1_ref, b1_ref, w2_ref, b2_ref, w3_ref, b3_ref, o_ref):
    # Feature-major: activations are [features, TILE_B], batch on the lane axis.
    x = x_ref[...]                                                      # [4,  Bt]

    # Layer 1: Linear(4 -> 64) + ReLU
    h1 = jnp.dot(w1_ref[...], x, preferred_element_type=jnp.float32)   # [64, Bt]
    h1 = jnp.maximum(h1 + b1_ref[...], 0.0)

    # Layer 2: Linear(64 -> 16) + Dropout(identity, eval) + ReLU
    h2 = jnp.dot(w2_ref[...], h1, preferred_element_type=jnp.float32)  # [16, Bt]
    h2 = jnp.maximum(h2 + b2_ref[...], 0.0)

    # Layer 3: Linear(16 -> 3)
    out = jnp.dot(w3_ref[...], h2, preferred_element_type=jnp.float32)  # [3, Bt]
    o_ref[...] = (out + b3_ref[...]).astype(o_ref.dtype)


def _round_up(n, m):
    return ((n + m - 1) // m) * m


def fully_connected(x, params, *, tile_b=2048):
    """x: [B, 4] float32.  params: weights in PyTorch [out, in], biases [out, 1]."""
    B = x.shape[0]
    w1, b1 = params["w1"], params["b1"]
    w2, b2 = params["w2"], params["b2"]
    w3, b3 = params["w3"], params["b3"]

    # Batch tile: multiple of 128 lanes, capped at tile_b; pad B to a multiple of it.
    tb = min(tile_b, _round_up(B, 128))
    b_pad = _round_up(B, tb)
    grid = (b_pad // tb,)

    # Feature-major input slab [4, B_pad]; zero-padded columns are sliced off below.
    x_t = jnp.pad(x, ((0, b_pad - B), (0, 0))).T

    const = lambda shape: pl.BlockSpec(shape, lambda i: (0, 0))

    flops = 2 * b_pad * (D_IN * D_H1 + D_H1 * D_H2 + D_H2 * D_OUT)
    bytes_accessed = (
        x_t.size * 4
        + (w1.size + b1.size + w2.size + b2.size + w3.size + b3.size) * 4
        + D_OUT * b_pad * 4
    )

    out_t = pl.pallas_call(
        mlp_kernel,
        out_shape=jax.ShapeDtypeStruct((D_OUT, b_pad), jnp.float32),
        grid=grid,
        in_specs=[
            pl.BlockSpec((D_IN, tb), lambda i: (0, i)),   # x tile, auto-pipelined
            const(w1.shape), const(b1.shape),             # tiny weights, VMEM-resident
            const(w2.shape), const(b2.shape),
            const(w3.shape), const(b3.shape),
        ],
        out_specs=pl.BlockSpec((D_OUT, tb), lambda i: (0, i)),
        compiler_params=pltpu.CompilerParams(
            dimension_semantics=("parallel",)),
        cost_estimate=pl.CostEstimate(
            flops=flops, transcendentals=0, bytes_accessed=bytes_accessed),
    )(x_t, w1, b1, w2, b2, w3, b3)

    # Back to the PyTorch [B, 3] layout, dropping batch padding.
    return out_t[:, :B].T


def init_params(key):
    """PyTorch nn.Linear default init (U(+/-1/sqrt(fan_in))); weights [out, in], biases [out, 1]."""
    dims = [(D_IN, D_H1), (D_H1, D_H2), (D_H2, D_OUT)]
    params = {}
    keys = jax.random.split(key, 2 * len(dims))
    for i, (fan_in, fan_out) in enumerate(dims):
        bound = 1.0 / jnp.sqrt(jnp.float32(fan_in))
        w = jax.random.uniform(keys[2 * i], (fan_out, fan_in), jnp.float32,
                               minval=-bound, maxval=bound)
        b = jax.random.uniform(keys[2 * i + 1], (fan_out, 1), jnp.float32,
                               minval=-bound, maxval=bound)
        params[f"w{i + 1}"] = w
        params[f"b{i + 1}"] = b
    return params


def reference(x, p):
    h1 = jnp.maximum(x @ p["w1"].T + p["b1"].T, 0.0)
    h2 = jnp.maximum(h1 @ p["w2"].T + p["b2"].T, 0.0)
    return h2 @ p["w3"].T + p["b3"].T


if __name__ == "__main__":
    key = jax.random.PRNGKey(0)
    k_param, k_x = jax.random.split(key)
    params = init_params(k_param)

    B = 8
    x = jax.random.normal(k_x, (B, D_IN), jnp.float32)

    out = fully_connected(x, params)
    out = jax.block_until_ready(out)

    ref = reference(x, params)
    assert out.shape == (B, D_OUT)
    assert jnp.allclose(out, ref, atol=1e-5, rtol=1e-5)

    print("KERNEL_OK")
</pallas_src>

<mosaic_0001>
module attributes {stable_mosaic.version = 11 : i64} {
  func.func @mlp_kernel(%arg0: i32, %arg1: memref<4x128xf32, #tpu.memory_space<vmem>>, %arg2: memref<64x4xf32, #tpu.memory_space<vmem>>, %arg3: memref<64x1xf32, #tpu.memory_space<vmem>>, %arg4: memref<16x64xf32, #tpu.memory_space<vmem>>, %arg5: memref<16x1xf32, #tpu.memory_space<vmem>>, %arg6: memref<3x16xf32, #tpu.memory_space<vmem>>, %arg7: memref<3x1xf32, #tpu.memory_space<vmem>>, %arg8: memref<3x128xf32, #tpu.memory_space<vmem>>) attributes {dimension_semantics = [#tpu.dimension_semantics<parallel>], iteration_bounds = array<i64: 1>, scalar_prefetch = 0 : i64, scratch_operands = 0 : i64, tpu.core_type = #tpu.core_type<tc>, window_params = [{transform_indices = @transform_0, window_bounds = array<i64: 4, 128>}, {pipeline_mode = #tpu.pipeline_mode<synchronous>, transform_indices = @transform_1, window_bounds = array<i64: 64, 4>}, {pipeline_mode = #tpu.pipeline_mode<synchronous>, transform_indices = @transform_2, window_bounds = array<i64: 64, 1>}, {pipeline_mode = #tpu.pipeline_mode<synchronous>, transform_indices = @transform_3, window_bounds = array<i64: 16, 64>}, {pipeline_mode = #tpu.pipeline_mode<synchronous>, transform_indices = @transform_4, window_bounds = array<i64: 16, 1>}, {pipeline_mode = #tpu.pipeline_mode<synchronous>, transform_indices = @transform_5, window_bounds = array<i64: 3, 16>}, {pipeline_mode = #tpu.pipeline_mode<synchronous>, transform_indices = @transform_6, window_bounds = array<i64: 3, 1>}, {transform_indices = @transform_7, window_bounds = array<i64: 3, 128>}]} {
    %c0 = arith.constant 0 : index
    %c0_0 = arith.constant 0 : index
    %0 = vector.load %arg1[%c0, %c0_0] : memref<4x128xf32, #tpu.memory_space<vmem>>, vector<4x128xf32>
    %c0_1 = arith.constant 0 : index
    %c0_2 = arith.constant 0 : index
    %1 = vector.load %arg2[%c0_1, %c0_2] : memref<64x4xf32, #tpu.memory_space<vmem>>, vector<64x4xf32>
    %cst = arith.constant dense<0.000000e+00> : vector<64x128xf32>
    %2 = tpu.matmul %1, %0, %cst {dimension_numbers = #tpu.dot_dimension_numbers<[1], [0], [0], [1], [0, 0, 1, 1], [], []>} : vector<64x4xf32>, vector<4x128xf32>, vector<64x128xf32> -> vector<64x128xf32>
    %c0_3 = arith.constant 0 : index
    %c0_4 = arith.constant 0 : index
    %3 = vector.load %arg3[%c0_3, %c0_4] : memref<64x1xf32, #tpu.memory_space<vmem>>, vector<64x1xf32>
    %4 = vector.broadcast %3 : vector<64x1xf32> to vector<64x128xf32>
    %5 = arith.addf %2, %4 : vector<64x128xf32>
    %cst_5 = arith.constant 0.000000e+00 : f32
    %6 = vector.broadcast %cst_5 : f32 to vector<64x128xf32>
    %7 = arith.maximumf %5, %6 : vector<64x128xf32>
    %c0_6 = arith.constant 0 : index
    %c0_7 = arith.constant 0 : index
    %8 = vector.load %arg4[%c0_6, %c0_7] : memref<16x64xf32, #tpu.memory_space<vmem>>, vector<16x64xf32>
    %cst_8 = arith.constant dense<0.000000e+00> : vector<16x128xf32>
    %9 = tpu.matmul %8, %7, %cst_8 {dimension_numbers = #tpu.dot_dimension_numbers<[1], [0], [0], [1], [0, 0, 1, 1], [], []>} : vector<16x64xf32>, vector<64x128xf32>, vector<16x128xf32> -> vector<16x128xf32>
    %c0_9 = arith.constant 0 : index
    %c0_10 = arith.constant 0 : index
    %10 = vector.load %arg5[%c0_9, %c0_10] : memref<16x1xf32, #tpu.memory_space<vmem>>, vector<16x1xf32>
    %11 = vector.broadcast %10 : vector<16x1xf32> to vector<16x128xf32>
    %12 = arith.addf %9, %11 : vector<16x128xf32>
    %cst_11 = arith.constant 0.000000e+00 : f32
    %13 = vector.broadcast %cst_11 : f32 to vector<16x128xf32>
    %14 = arith.maximumf %12, %13 : vector<16x128xf32>
    %c0_12 = arith.constant 0 : index
    %c0_13 = arith.constant 0 : index
    %15 = vector.load %arg6[%c0_12, %c0_13] : memref<3x16xf32, #tpu.memory_space<vmem>>, vector<3x16xf32>
    %cst_14 = arith.constant dense<0.000000e+00> : vector<3x128xf32>
    %16 = tpu.matmul %15, %14, %cst_14 {dimension_numbers = #tpu.dot_dimension_numbers<[1], [0], [0], [1], [0, 0, 1, 1], [], []>} : vector<3x16xf32>, vector<16x128xf32>, vector<3x128xf32> -> vector<3x128xf32>
    %c0_15 = arith.constant 0 : index
    %c0_16 = arith.constant 0 : index
    %17 = vector.load %arg7[%c0_15, %c0_16] : memref<3x1xf32, #tpu.memory_space<vmem>>, vector<3x1xf32>
    %18 = vector.broadcast %17 : vector<3x1xf32> to vector<3x128xf32>
    %19 = arith.addf %16, %18 : vector<3x128xf32>
    %c0_17 = arith.constant 0 : index
    %c0_18 = arith.constant 0 : index
    %20 = vector.load %arg8[%c0_17, %c0_18] : memref<3x128xf32, #tpu.memory_space<vmem>>, vector<3x128xf32>
    tpu.vector_store %arg8[%c0_17, %c0_18], %19 {strides = array<i32>} : memref<3x128xf32, #tpu.memory_space<vmem>>, vector<3x128xf32>,
    return
  }
  func.func @transform_0(%arg0: i32) -> (i32, i32) {
    %c0_i32 = arith.constant 0 : i32
    %c0_i32_0 = arith.constant 0 : i32
    return %c0_i32, %arg0 : i32, i32
  }
  func.func @transform_1(%arg0: i32) -> (i32, i32) {
    %c0_i32 = arith.constant 0 : i32
    %c0_i32_0 = arith.constant 0 : i32
    %c0_i32_1 = arith.constant 0 : i32
    return %c0_i32, %c0_i32_0 : i32, i32
  }
  func.func @transform_2(%arg0: i32) -> (i32, i32) {
    %c0_i32 = arith.constant 0 : i32
    %c0_i32_0 = arith.constant 0 : i32
    %c0_i32_1 = arith.constant 0 : i32
    return %c0_i32, %c0_i32_0 : i32, i32
  }
  func.func @transform_3(%arg0: i32) -> (i32, i32) {
    %c0_i32 = arith.constant 0 : i32
    %c0_i32_0 = arith.constant 0 : i32
    %c0_i32_1 = arith.constant 0 : i32
    return %c0_i32, %c0_i32_0 : i32, i32
  }
  func.func @transform_4(%arg0: i32) -> (i32, i32) {
    %c0_i32 = arith.constant 0 : i32
    %c0_i32_0 = arith.constant 0 : i32
    %c0_i32_1 = arith.constant 0 : i32
    return %c0_i32, %c0_i32_0 : i32, i32
  }
  func.func @transform_5(%arg0: i32) -> (i32, i32) {
    %c0_i32 = arith.constant 0 : i32
    %c0_i32_0 = arith.constant 0 : i32
    %c0_i32_1 = arith.constant 0 : i32
    return %c0_i32, %c0_i32_0 : i32, i32
  }
  func.func @transform_6(%arg0: i32) -> (i32, i32) {
    %c0_i32 = arith.constant 0 : i32
    %c0_i32_0 = arith.constant 0 : i32
    %c0_i32_1 = arith.constant 0 : i32
    return %c0_i32, %c0_i32_0 : i32, i32
  }
  func.func @transform_7(%arg0: i32) -> (i32, i32) {
    %c0_i32 = arith.constant 0 : i32
    %c0_i32_0 = arith.constant 0 : i32
    return %c0_i32, %arg0 : i32, i32
  }
}

</mosaic_0001>

<bundles_post_ra>
// kernel: tpu_custom_call.1
= control target key start
LH: loop header
LB: loop body
LE: loop exit
PB: predicated region body
PF: predicated region fallthrough
CT: control target
= control target key end

     0   :  { %vm109_vm0 = vcmask 1043456   ;;  %vm84_vm1 = vcmask 31744   ;;  %v544_v4 = vmov 0   ;;  %s680_s0 = inlined_call_operand.vmem [shape: f32[4,128], index: 0, kind: input, shape index: {}]   ;;  %s681_s1 = inlined_call_operand.vmem [shape: f32[64,4], index: 1, kind: input, shape index: {}]   ;;  %s682_s2 = inlined_call_operand.vmem [shape: f32[64,1], index: 2, kind: input, shape index: {}]   ;;  %s683_s3 = inlined_call_operand.vmem [shape: f32[16,64], index: 3, kind: input, shape index: {}]   ;;  %s684_s4 = inlined_call_operand.vmem [shape: f32[16,1], index: 4, kind: input, shape index: {}]   ;;  %s685_s5 = inlined_call_operand.vmem [shape: f32[3,16], index: 5, kind: input, shape index: {}]   ;;  %s686_s6 = inlined_call_operand.vmem [shape: f32[3,1], index: 6, kind: input, shape index: {}]   ;;  %s687_s7 = inlined_call_operand.hbm [shape: f32[3,128], index: 7, kind: output, shape index: {}]  }
   0x1   :  { %v27_v0 = vld [vmem:[%s680_s0] sm:$0xf]  ;;  %v29_v2 = vld [vmem:[%s681_s1 + $0x8] sm:$0xff]  ;;  %v30_v3 = vld [vmem:[%s681_s1 + $0x10] sm:$0xff]  ;;  %518 = vset.pattern.permute.xlu0 %v544_v4  ;;  %519 = vset.pattern.permute.xlu1 %v544_v4 }
   0x2   :  { %v28_v1 = vld [vmem:[%s681_s1] sm:$0xff]  ;;  %454 = vmatprep.subr.msk.mxu0 %vm109_vm0, %v27_v0  ;;  %v38_v6 = vld [vmem:[%s682_s2 + $0x10] sm:$0xff]  ;;  %v31_v7 = vld [vmem:[%s681_s1 + $0x18] sm:$0xff] }
   0x3   :  { %456 = vmatprep.mubr.msk.f32.mxu0 %vm84_vm1, %v28_v1  ;;  %455 = vmatpush3.msk.msra.mxu0 %vm109_vm0, %v27_v0  ;;  %v36_v5 = vld [vmem:[%s682_s2] sm:$0xff]  ;;  %v37_v9 = vld [vmem:[%s682_s2 + $0x8] sm:$0xff]  ;;  %v39_v10 = vld [vmem:[%s682_s2 + $0x18] sm:$0xff] }
   0x4   :  { %457 = vmatmul.mubr.msk.f32.vlgmr.msra.gmra.mrb[0].mxu0 %vm84_vm1, %v29_v2  ;;  %46 = vperm.xlu0 %518, %v36_v5   ;;  %v32_v8 = vld [vmem:[%s681_s1 + $0x20] sm:$0xff] }
   0x5   :  { %459 = vmatprep.mubr.msk.f32.mxu0 %vm84_vm1, %v30_v3  ;;  %56 = vperm.xlu1 %519, %v38_v6  }
   0x6   :  { %12 = vsyncpa [#allocation3], 0  ;;  %v33_v11 = vld [vmem:[%s681_s1 + $0x28] sm:$0xff]  ;;  %v34_v12 = vld [vmem:[%s681_s1 + $0x30] sm:$0xff]  ;;  %vm240_vm2 = vcmask 523264   ;;  %v545_v59 = vmov 0.0|0.0  }
   0x7   :  { %v40_v13 = vld [vmem:[%s682_s2 + $0x20] sm:$0xff]  ;;  %v41_v14 = vld [vmem:[%s682_s2 + $0x28] sm:$0xff]  ;;  %v35_v15 = vld [vmem:[%s681_s1 + $0x38] sm:$0xff]  ;;  %510 = vmatprep.subr.bf16.mxu0 %v545_v59  ;;  %vm546_vm3 = vmmov 0   ;;  %v547_v60 = vmov 0.0   ;;  %vm331_vm4 = vcmask 130048  }
   0x8   :  { %460 = vmatmul.mubr.msk.f32.gmra.mrb[2].mxu0 %vm84_vm1, %v31_v7  ;;  %51 = vperm.xlu0 %518, %v37_v9   ;;  %v42_v16 = vld [vmem:[%s682_s2 + $0x30] sm:$0xff]  ;;  %v43_v17 = vld [vmem:[%s682_s2 + $0x38] sm:$0xff]  ;;  %v228_v18 = vld [vmem:[%s684_s4] sm:$0xff] }
   0x9   :  { %462 = vmatprep.mubr.msk.f32.mxu0 %vm84_vm1, %v32_v8  ;;  %61 = vperm.xlu1 %519, %v39_v10   ;;  %v229_v19 = vld [vmem:[%s684_s4 + $0x8] sm:$0xff]  ;;  %v325_v20 = vld [vmem:[%s686_s6] sm:$0x7] }
   0xa   :  { %v226_v21 = vld [vmem:[%s683_s3] sm:$0xff]  ;;  %v227_v58 = vld [vmem:[%s683_s3 + $0x8] sm:$0xff]  ;;  %s548_s3 = smov [#allocation2]  }
   0xb   :  { %484 = vmatprep.mubr.msk.f32.mxu1 %vm240_vm2, %v226_v21  ;;  %v324_v6 = vld [vmem:[%s685_s5] sm:$0x7]  ;;  %s412_s18 = sshll.u32 %s548_s3, 4  ;;  %s413_s18 = int_to_ptr.vmem [resolvable:$true] %s412_s18 }
   0xc   :  { %463 = vmatmul.mubr.msk.f32.gmra.mrb[4].mxu0 %vm84_vm1, %v33_v11  ;;  %66 = vperm.xlu0 %518, %v40_v13   ;;  %s520_s19 = scalar_lea.vmem %s413_s18, 64  ;;  %p525_p1 = scmp.lt.s32.totalorder %s413_s18, %s413_s18 }
   0xd   :  { %465 = vmatprep.mubr.msk.f32.mxu0 %vm84_vm1, %v34_v12  ;;  %71 = vperm.xlu1 %519, %v41_v14   ;;  %p521_p0 = scmp.ne.s32.totalorder %s413_s18, %s520_s19  ;;  %p526_p2 = scmp.lt.s32.totalorder %s520_s19, %s520_s19 }
   0xf   :  { %p527_p3 = por %p526_p2, %p525_p1 }
  0x10   :  { %466 = vmatmul.mubr.msk.f32.gmra.mrb[6].mxu0 %vm84_vm1, %v35_v15  ;;  %76 = vperm.xlu0 %518, %v42_v16  }
  0x11   :  { %81 = vperm.xlu1 %519, %v43_v17   ;;  %491 = vmatprep.mubr.msk.f32.mxu0 %vm546_vm3, %v547_v60  ;;  %p528_p4 = pnand %p527_p3, %p521_p0 }
  0x14   :  { %232 = vperm.xlu0 %518, %v228_v18  }
  0x15   :  { %237 = vperm.xlu1 %519, %v229_v19  }
  0x18   :  { %328 = vperm.xlu0 %518, %v325_v20  }
  0x83   :  { %v47_v22 = vpop.permute.xlu0 %46 }
  0x84   :  { %v57_v23 = vpop.permute.xlu1 %56 }
  0x87   :  { %v52_v24 = vpop.permute.xlu0 %51 }
  0x88   :  { %v62_v25 = vpop.permute.xlu1 %61 }
  0x8b   :  { %v67_v38 = vpop.permute.xlu0 %66 }
  0x8c   :  { %v72_v35 = vpop.permute.xlu1 %71 }
  0x8f   :  { %v77_v50 = vpop.permute.xlu0 %76 }
  0x90   :  { %v82_v47 = vpop.permute.xlu1 %81 }
  0x93   :  { %v233_v63 = vpop.permute.xlu0 %232 }
  0x94   :  { %v238_v61 = vpop.permute.xlu1 %237 }
  0x97   :  { %v329_v7 = vpop.permute.xlu0 %328 }
  0xd7   :  { %v458_v26 = vpop.f32.mrb[0].mxu0 }
  0xd8   :  { %v185_v27 = vadd.f32 %v458_v26, %v52_v24  ;;  %v179_v28 = vpop.f32.mrb[1].mxu0 }
  0xd9   :  { %v180_v29 = vadd.f32 %v179_v28, %v47_v22 }
  0xda   :  { %v219_v30 = vmax.f32 %v185_v27, 0.0 }
  0xdb   :  { %v218_v31 = vmax.f32 %v180_v29, 0.0  ;;  %v461_v32 = vpop.f32.mrb[2].mxu0 }
  0xdc   :  { %v195_v33 = vadd.f32 %v461_v32, %v62_v25  ;;  %v189_v34 = vpop.f32.mrb[3].mxu0 }
  0xdd   :  { %v190_v36 = vadd.f32 %v189_v34, %v57_v23  ;;  %v494_v37 = vpack.c.bf16 %v219_v30, %v218_v31 }
  0xde   :  { %v221_v39 = vmax.f32 %v195_v33, 0.0 }
  0xdf   :  { %v220_v40 = vmax.f32 %v190_v36, 0.0  ;;  %v464_v41 = vpop.f32.mrb[4].mxu0  ;;  %495 = vmatprep.subr.bf16.mxu1 %v494_v37 }
  0xe0   :  { %v205_v42 = vadd.f32 %v464_v41, %v72_v35  ;;  %v199_v43 = vpop.f32.mrb[5].mxu0  ;;  %497 = vmatpush3.bf16.msra.mxu1 %v494_v37 }
  0xe1   :  { %v498_v44 = vpack.c.bf16 %v221_v39, %v220_v40  ;;  %v200_v45 = vadd.f32 %v199_v43, %v67_v38 }
  0xe2   :  { %v223_v46 = vmax.f32 %v205_v42, 0.0 }
  0xe3   :  { %v222_v48 = vmax.f32 %v200_v45, 0.0  ;;  %v467_v49 = vpop.f32.mrb[6].mxu0  ;;  %499 = vmatprep.subr.bf16.mxu1 %v498_v44 }
  0xe4   :  { %v215_v51 = vadd.f32 %v467_v49, %v82_v47  ;;  %v209_v52 = vpop.f32.mrb[7].mxu0  ;;  %501 = vmatpush3.bf16.msra.mxu1 %v498_v44 }
  0xe5   :  { %v502_v53 = vpack.c.bf16 %v223_v46, %v222_v48  ;;  %v210_v54 = vadd.f32 %v209_v52, %v77_v50 }
  0xe6   :  { %v225_v55 = vmax.f32 %v215_v51, 0.0 }
  0xe7   :  { %v224_v56 = vmax.f32 %v210_v54, 0.0  ;;  %503 = vmatprep.subr.bf16.mxu1 %v502_v53 }
  0xe8   :  { %505 = vmatpush3.bf16.msra.mxu1 %v502_v53 }
  0xe9   :  { %v506_v57 = vpack.c.bf16 %v225_v55, %v224_v56 }
  0xeb   :  { %507 = vmatprep.subr.bf16.mxu1 %v506_v57 }
  0xec   :  { %509 = vmatpush3.bf16.msra.mxu1 %v506_v57 }
  0xef   :  { %485 = vmatmul.mubr.msk.f32.vlgmr.msra.gmra.mrb[0].mxu1 %vm240_vm2, %v227_v58 }
 0x1c2   :  { %v486_v62 = vpop.f32.mrb[0].mxu1 }
 0x1c3   :  { %v319_v0 = vadd.f32 %v486_v62, %v238_v61  ;;  %v313_v1 = vpop.f32.mrb[1].mxu1 }
 0x1c4   :  { %v314_v2 = vadd.f32 %v313_v1, %v233_v63 }
 0x1c5   :  { %v323_v3 = vmax.f32 %v319_v0, 0.0 }
 0x1c6   :  { %v322_v4 = vmax.f32 %v314_v2, 0.0 }
 0x1c8   :  { %v511_v5 = vpack.c.bf16 %v323_v3, %v322_v4 }
 0x1ca   :  { %512 = vmatpush3.bf16.msra.mxu0 %v511_v5 }
 0x1cd   :  { %492 = vmatmul.mubr.msk.f32.vlgmr.msra.gmra.mrb[8].mxu0 %vm331_vm4, %v324_v6 }
 0x2a0   :  { %v401_v8 = vpop.f32.mrb[8].mxu0 }
 0x2a1   :  { %v402_v9 = vadd.f32 %v401_v8, %v329_v7  ;;  %v493_v10 = vpop.f32.mrb[9].mxu0 }
 0x2a3   :  { %405 = vst [vmem:[#allocation2] sm:$0x7] %v402_v9 }
 0x2a4   :  { %531 = shalt.err (!%p528_p4)
}
 0x2a5   :  { %s532_s5 = scalar_lea.hbm %s687_s7, 64 }
 0x2a6   :  { %p533_p5 = scmp.ne.s32.totalorder %s687_s7, %s532_s5  ;;  %p536_p6 = scmp.lt.u32.totalorder %s532_s5, %s687_s7 }
 0x2a8   :  { %p538_p7 = pnand %p536_p6, %p533_p5 }
 0x2aa   :  { %541 = shalt.err (!%p538_p7)
}
 0x2ab   :  { %415 = dma.vmem_to_hbm [thread:$0]  %s413_s18, 64, %s687_s7, [#allocation3]  }
 0x2ac   :  { %542 = dma.done.wait [#allocation3], 64  }
 0x2ad   :  { %543 = vsyncadd [#allocation3], 4294967232 }
 0x2ae   :  { %419 = vsyncpa [#allocation3], 1 }

</bundles_post_ra>
